<compile_context>
chip_gen: v5e
topology: v5e:2x2
jax: 0.10.0
libtpu: 0.0.40
codegen_flags: <defaults>
</compile_context>

<pallas_src>
import jax
import jax.numpy as jnp
from jax.experimental import pallas as pl
from jax.experimental.pallas import tpu as pltpu


_SUBLANE = 8
_MAX_TILE_M = 4096


def _round_up(v, m):
    return ((v + m - 1) // m) * m


def _vmem_capacity_bytes():
    """Per-core VMEM capacity; conservative 64 MiB (v7x) fallback if unqueryable."""
    try:
        return int(pltpu.get_tpu_info().vmem_capacity_bytes)
    except Exception:
        return 64 * 1024 * 1024


def _pick_tile_m(M, L, D, K, in_itemsize, out_itemsize, vmem_cap):
    """Largest row tile that fits the VMEM budget, with >=2 grid steps if possible."""
    if M <= _SUBLANE:
        return M  # single full-extent block (legal: equals the full array dim)
    # Resident operands ([Wv^T|Wu^T], [bv|bu], Wa^T, ba). Budget them at 2x to
    # cover default double-buffering of invariant inputs.
    weight_bytes = 2 * (L * 2 * D + 2 * D + D * K + K) * 4
    budget = int(vmem_cap * 0.6) - weight_bytes
    per_row = 2 * (L * in_itemsize + K * out_itemsize)  # double-buffered H + out
    tile = max(_SUBLANE, budget // max(per_row, 1))
    tile = min(tile, _MAX_TILE_M)
    tile = (tile // _SUBLANE) * _SUBLANE                # stay within budget
    tile = min(tile, _round_up(M, _SUBLANE))
    # Keep at least two grid steps (megacore sharding on v7x + live pipelining).
    tile = min(tile, _round_up(-(-M // 2), _SUBLANE))
    return max(tile, _SUBLANE)


def _gated_attention_kernel(h_ref, wvu_ref, bvu_ref, wa_ref, ba_ref, a_ref):
    # h_ref:   (TILE_M, L)   activation tile (streamed per grid step, native dtype)
    # wvu_ref: (L, 2D)       [Wv^T | Wu^T]   (resident across the grid)
    # bvu_ref: (1, 2D)       [bv | bu]       (f32)
    # wa_ref:  (D, K)        Wa^T, narrow (no lane padding in HBM)
    # ba_ref:  (1, K)        ba              (f32)
    # a_ref:   (TILE_M, K)   narrow output tile (K == full last dim)
    d = wa_ref.shape[0]
    h = h_ref[...]
    # Fused V|U projection: one MXU pass over the H tile, f32 accumulation.
    vu = jnp.dot(h, wvu_ref[...], preferred_element_type=jnp.float32) + bvu_ref[...]
    a_v = jnp.tanh(vu[:, :d])
    a_u = jax.nn.sigmoid(vu[:, d:])
    gated = (a_v * a_u).astype(wa_ref.dtype)
    logits = (jnp.dot(gated, wa_ref[...], preferred_element_type=jnp.float32)
              + ba_ref[...])
    a_ref[...] = logits.astype(a_ref.dtype)


def gated_attention_forward(x, wv, bv, wu, bu, wa, ba, *, tile_m=None):
    """Pallas equivalent of GatedAttention.forward.

    x:  (B, N, ...)  3D/4D/5D; trailing dims are flattened into L.
    wv: (D, L), bv: (D,)   attention_V Linear params (PyTorch layout)
    wu: (D, L), bu: (D,)   attention_U Linear params
    wa: (K, D), ba: (K,)   attention_weights Linear params
    Returns (A, H) with A: (B, N, K), H: (B, N, L).
    """
    if x.ndim not in (3, 4, 5):
        raise ValueError(f"expected 3D/4D/5D input, got {x.ndim}D")
    B, N = x.shape[0], x.shape[1]
    H = x.reshape(B, N, -1)                 # same as the PyTorch .view()
    L = H.shape[-1]

    D, l_w = wv.shape
    assert l_w == L, (l_w, L)
    K = wa.shape[0]
    M = B * N

    h2d = H.reshape(M, L)                   # native dtype: no extra HBM cast pass
    cdt = h2d.dtype                         # MXU input dtype (bf16 stays bf16)
    out_dtype = h2d.dtype

    # Fused [V | U] projection operands + narrow (un-padded) attention head.
    wvu = jnp.concatenate([wv.T, wu.T], axis=1).astype(cdt)           # (L, 2D)
    bvu = jnp.concatenate([bv, bu]).reshape(1, 2 * D).astype(jnp.float32)
    wa_t = wa.T.astype(cdt)                                           # (D, K)
    ba2 = ba.reshape(1, K).astype(jnp.float32)

    vmem_cap = _vmem_capacity_bytes()
    if tile_m is None:
        tile_m = _pick_tile_m(M, L, D, K, jnp.dtype(cdt).itemsize,
                              jnp.dtype(out_dtype).itemsize, vmem_cap)
    grid = (pl.cdiv(M, tile_m),)            # partial last block handled by Pallas

    resident = lambda i: (0, 0)             # weights / biases stay put in VMEM
    rowwise = lambda i: (i, 0)

    vmem_limit = max(32 * 1024 * 1024,
                     min(int(vmem_cap * 0.9), 96 * 1024 * 1024))

    a2d = pl.pallas_call(
        _gated_attention_kernel,
        out_shape=jax.ShapeDtypeStruct((M, K), out_dtype),
        grid_spec=pltpu.PrefetchScalarGridSpec(
            num_scalar_prefetch=0,
            grid=grid,
            in_specs=[
                pl.BlockSpec((tile_m, L), rowwise),   # H tile (streamed)
                pl.BlockSpec((L, 2 * D), resident),   # [Wv^T | Wu^T]
                pl.BlockSpec((1, 2 * D), resident),   # [bv | bu]
                pl.BlockSpec((D, K), resident),       # Wa^T (narrow)
                pl.BlockSpec((1, K), resident),       # ba
            ],
            out_specs=pl.BlockSpec((tile_m, K), rowwise),
        ),
        compiler_params=pltpu.CompilerParams(
            # Row tiles are independent -> megacore sharding on v7x.
            dimension_semantics=("parallel",),
            vmem_limit_bytes=vmem_limit,
        ),
    )(h2d, wvu, bvu, wa_t, ba2)

    A = a2d.reshape(B, N, K)
    return A, H


if __name__ == "__main__":
    key = jax.random.PRNGKey(0)
    k_x, k_wv, k_bv, k_wu, k_bu, k_wa, k_ba = jax.random.split(key, 7)

    # 4D input (B, N, h, w) -> H = (B, N, L) with L = h*w, per the module's view().
    B, N, h, w = 2, 8, 4, 4
    L, D, K = h * w, 32, 2

    x = jax.random.normal(k_x, (B, N, h, w), jnp.float32)
    wv = jax.random.normal(k_wv, (D, L), jnp.float32) * 0.1
    bv = jax.random.normal(k_bv, (D,), jnp.float32) * 0.01
    wu = jax.random.normal(k_wu, (D, L), jnp.float32) * 0.1
    bu = jax.random.normal(k_bu, (D,), jnp.float32) * 0.01
    wa = jax.random.normal(k_wa, (K, D), jnp.float32) * 0.1
    ba = jax.random.normal(k_ba, (K,), jnp.float32) * 0.01

    A, H = gated_attention_forward(x, wv, bv, wu, bu, wa, ba)
    A = jax.block_until_ready(A)
    H = jax.block_until_ready(H)

    # Pure-JAX reference of the PyTorch forward.
    H_ref = x.reshape(B, N, -1)
    av_ref = jnp.tanh(H_ref @ wv.T + bv)
    au_ref = jax.nn.sigmoid(H_ref @ wu.T + bu)
    a_ref = (av_ref * au_ref) @ wa.T + ba

    assert A.shape == (B, N, K)
    assert H.shape == (B, N, L)
    assert jnp.allclose(H, H_ref)
    assert jnp.allclose(A, a_ref, atol=1e-4, rtol=1e-4)

    print("KERNEL_OK")
</pallas_src>

<mosaic_0001>
module attributes {stable_mosaic.version = 11 : i64} {
  func.func @_gated_attention_kernel(%arg0: i32, %arg1: memref<8x16xf32, #tpu.memory_space<vmem>>, %arg2: memref<16x64xf32, #tpu.memory_space<vmem>>, %arg3: memref<1x64xf32, #tpu.memory_space<vmem>>, %arg4: memref<32x2xf32, #tpu.memory_space<vmem>>, %arg5: memref<1x2xf32, #tpu.memory_space<vmem>>, %arg6: memref<8x2xf32, #tpu.memory_space<vmem>>) attributes {dimension_semantics = [#tpu.dimension_semantics<parallel>], iteration_bounds = array<i64: 2>, scalar_prefetch = 0 : i64, scratch_operands = 0 : i64, tpu.core_type = #tpu.core_type<tc>, window_params = [{transform_indices = @transform_0, window_bounds = array<i64: 8, 16>}, {pipeline_mode = #tpu.pipeline_mode<synchronous>, transform_indices = @transform_1, window_bounds = array<i64: 16, 64>}, {pipeline_mode = #tpu.pipeline_mode<synchronous>, transform_indices = @transform_2, window_bounds = array<i64: 1, 64>}, {pipeline_mode = #tpu.pipeline_mode<synchronous>, transform_indices = @transform_3, window_bounds = array<i64: 32, 2>}, {pipeline_mode = #tpu.pipeline_mode<synchronous>, transform_indices = @transform_4, window_bounds = array<i64: 1, 2>}, {transform_indices = @transform_5, window_bounds = array<i64: 8, 2>}]} {
    %c0 = arith.constant 0 : index
    %c0_0 = arith.constant 0 : index
    %0 = vector.load %arg1[%c0, %c0_0] : memref<8x16xf32, #tpu.memory_space<vmem>>, vector<8x16xf32>
    %c0_1 = arith.constant 0 : index
    %c0_2 = arith.constant 0 : index
    %1 = vector.load %arg2[%c0_1, %c0_2] : memref<16x64xf32, #tpu.memory_space<vmem>>, vector<16x64xf32>
    %cst = arith.constant dense<0.000000e+00> : vector<8x64xf32>
    %2 = tpu.matmul %0, %1, %cst {dimension_numbers = #tpu.dot_dimension_numbers<[1], [0], [0], [1], [0, 0, 1, 1], [], []>} : vector<8x16xf32>, vector<16x64xf32>, vector<8x64xf32> -> vector<8x64xf32>
    %c0_3 = arith.constant 0 : index
    %c0_4 = arith.constant 0 : index
    %3 = vector.load %arg3[%c0_3, %c0_4] : memref<1x64xf32, #tpu.memory_space<vmem>>, vector<1x64xf32>
    %4 = vector.broadcast %3 : vector<1x64xf32> to vector<8x64xf32>
    %5 = arith.addf %2, %4 : vector<8x64xf32>
    %6 = vector.extract_strided_slice %5 {offsets = [0, 0], sizes = [8, 32], strides = [1, 1]} : vector<8x64xf32> to vector<8x32xf32>
    %7 = math.tanh %6 : vector<8x32xf32>
    %8 = vector.extract_strided_slice %5 {offsets = [0, 32], sizes = [8, 32], strides = [1, 1]} : vector<8x64xf32> to vector<8x32xf32>
    %9 = arith.negf %8 : vector<8x32xf32>
    %10 = math.exp %9 : vector<8x32xf32>
    %cst_5 = arith.constant 1.000000e+00 : f32
    %11 = vector.broadcast %cst_5 : f32 to vector<8x32xf32>
    %12 = arith.addf %11, %10 : vector<8x32xf32>
    %13 = arith.divf %11, %12 : vector<8x32xf32>
    %14 = arith.mulf %7, %13 : vector<8x32xf32>
    %c0_6 = arith.constant 0 : index
    %c0_7 = arith.constant 0 : index
    %15 = vector.load %arg4[%c0_6, %c0_7] : memref<32x2xf32, #tpu.memory_space<vmem>>, vector<32x2xf32>
    %cst_8 = arith.constant dense<0.000000e+00> : vector<8x2xf32>
    %16 = tpu.matmul %14, %15, %cst_8 {dimension_numbers = #tpu.dot_dimension_numbers<[1], [0], [0], [1], [0, 0, 1, 1], [], []>} : vector<8x32xf32>, vector<32x2xf32>, vector<8x2xf32> -> vector<8x2xf32>
    %c0_9 = arith.constant 0 : index
    %c0_10 = arith.constant 0 : index
    %17 = vector.load %arg5[%c0_9, %c0_10] : memref<1x2xf32, #tpu.memory_space<vmem>>, vector<1x2xf32>
    %18 = vector.broadcast %17 : vector<1x2xf32> to vector<8x2xf32>
    %19 = arith.addf %16, %18 : vector<8x2xf32>
    %c0_11 = arith.constant 0 : index
    %c0_12 = arith.constant 0 : index
    %20 = vector.load %arg6[%c0_11, %c0_12] : memref<8x2xf32, #tpu.memory_space<vmem>>, vector<8x2xf32>
    tpu.vector_store %arg6[%c0_11, %c0_12], %19 {strides = array<i32>} : memref<8x2xf32, #tpu.memory_space<vmem>>, vector<8x2xf32>,
    return
  }
  func.func @transform_0(%arg0: i32) -> (i32, i32) {
    %c0_i32 = arith.constant 0 : i32
    %c0_i32_0 = arith.constant 0 : i32
    return %arg0, %c0_i32 : i32, i32
  }
  func.func @transform_1(%arg0: i32) -> (i32, i32) {
    %c0_i32 = arith.constant 0 : i32
    %c0_i32_0 = arith.constant 0 : i32
    %c0_i32_1 = arith.constant 0 : i32
    return %c0_i32, %c0_i32_0 : i32, i32
  }
  func.func @transform_2(%arg0: i32) -> (i32, i32) {
    %c0_i32 = arith.constant 0 : i32
    %c0_i32_0 = arith.constant 0 : i32
    %c0_i32_1 = arith.constant 0 : i32
    return %c0_i32, %c0_i32_0 : i32, i32
  }
  func.func @transform_3(%arg0: i32) -> (i32, i32) {
    %c0_i32 = arith.constant 0 : i32
    %c0_i32_0 = arith.constant 0 : i32
    %c0_i32_1 = arith.constant 0 : i32
    return %c0_i32, %c0_i32_0 : i32, i32
  }
  func.func @transform_4(%arg0: i32) -> (i32, i32) {
    %c0_i32 = arith.constant 0 : i32
    %c0_i32_0 = arith.constant 0 : i32
    %c0_i32_1 = arith.constant 0 : i32
    return %c0_i32, %c0_i32_0 : i32, i32
  }
  func.func @transform_5(%arg0: i32) -> (i32, i32) {
    %c0_i32 = arith.constant 0 : i32
    %c0_i32_0 = arith.constant 0 : i32
    return %arg0, %c0_i32 : i32, i32
  }
}

</mosaic_0001>

<bundles_post_ra>
// kernel: tpu_custom_call.1
= control target key start
LH: loop header
LB: loop body
LE: loop exit
PB: predicated region body
PF: predicated region fallthrough
CT: control target
= control target key end

     0   :  { %s431_s18 = smov 0   ;;  %s479_s0 = inlined_call_operand.vmem [shape: f32[16,16], index: 0, kind: input, shape index: {}]   ;;  %s480_s1 = inlined_call_operand.vmem [shape: f32[16,64], index: 1, kind: input, shape index: {}]   ;;  %s481_s2 = inlined_call_operand.vmem [shape: f32[1,64], index: 2, kind: input, shape index: {}]   ;;  %s482_s3 = inlined_call_operand.vmem [shape: f32[32,2], index: 3, kind: input, shape index: {}]   ;;  %s483_s4 = inlined_call_operand.vmem [shape: f32[1,2], index: 4, kind: input, shape index: {}]   ;;  %s484_s5 = inlined_call_operand.vmem [shape: f32[16,2], index: 5, kind: output, shape index: {}]  }
   0x1 LB: > { %s363_s19 = sadd.s32 4294967295, %s398_s18   ;;  %p367_p0 = scmp.ge.s32.totalorder %s398_s18, 1  ;;  %s398_s18 = sphi %s431_s18, %s15_s18  }
   0x2   : > { %p186_p1 = scmp.lt.s32.totalorder %s398_s18, 3 }
   0x4   : > { %p187_p2 = pnand %p367_p0, %p186_p1 }
   0x5   : > { %p212_p3 = scmp.lt.s32.totalorder (!%p187_p2), %s363_s19, 1  ;;  %s400_s9 = smov (!%p187_p2), 96  }
   0x6   : > { %190 = sbr.rel (%p187_p2) target bundleno = 417 (0x1a1), region = 40 }
   0xb   : > { %v222_v0 = vld [vmem:[%s480_s1 + $0x8] sm:$0xff]  ;;  %v221_v1 = vld [vmem:[%s480_s1] sm:$0xff]  ;;  %s486_s19 = smov (!%p212_p3, %s363_s19), 1  ;;  %vm227_vm0 = vcmask 130048   ;;  %v279_v4 = vld [vmem:[%s482_s3 + $0x18] sm:$0xff]  ;;  %vm284_vm5 = vcmask 261120  }
   0xc   : > { %245 = vmatpush.msra.mxu0 %v222_v0  ;;  %s368_s24 = sshll.u32 %s486_s19, 3  ;;  %v384_v3 = vld [vmem:[%s481_s2] ss:$0 sm:$0xff]  ;;  %v278_v5 = vld [vmem:[%s482_s3 + $0x10] sm:$0xff]  ;;  %300 = vmatpush.msra.mxu1 %v279_v4  ;;  %v277_v21 = vld [vmem:[%s482_s3 + $0x8] sm:$0xff]  ;;  %vm308_vm6 = vcmask 15360  }
   0xd   : > { %s215_s27 = scalar_lea.vmem %s479_s0, %s368_s24  ;;  %v276_v22 = vld [vmem:[%s482_s3] sm:$0xff]  ;;  %s219_s20 = scalar_lea.vmem %s484_s5, %s368_s24 }
   0xe   : > { %246 = vmatpush.msra.mxu0 %v221_v1  ;;  %v220_v2 = vld [vmem:[%s215_s27] sm:$0xff]  ;;  %301 = vmatpush.msra.mxu1 %v278_v5 }
   0xf   : > { %370 = vmatmul.msk.f32.vlgmr.msra.gmra.mxu0 %vm227_vm0, %v220_v2  ;;  %v385_v26 = vld [vmem:[%s483_s4] ss:$0 sm:$0xff] }
  0x10   : > { %302 = vmatpush.msra.mxu1 %v277_v21 }
  0x12   : > { %303 = vmatpush.msra.mxu1 %v276_v22 }
  0x8c   : > { %v248_v6 = vpop.f32.mrf.mxu0 }
  0x8d   : > { %v249_v7 = vadd.f32 %v384_v3, %v248_v6 }
  0x8f   : > { %v371_v8 = vmul.f32 -1.442695, %v249_v7 }
  0x91   : > { %386 = vpow2.f32 %v371_v8 }
  0x97   : > { %v387_v9 = vpop.eup %386 }
  0x98   : > { %v255_v10 = vadd.f32 1.0, %v387_v9 }
  0x9a   : > { %388 = vrcp.f32 %v255_v10  ;;  %v267_v14 = vand.u32 2147483648, %v255_v10  ;;  %v265_v16 = vand.u32 2147483647, %v255_v10  ;;  %vm261_vm2 = vweird.f32 %v255_v10 }
  0x9b   : > { %390 = vtanh.f32 %v249_v7 }
  0x9c   : > { %v268_v18 = vor.u32 1.1754944e-38, %v267_v14  ;;  %vm266_vm4 = vcmp.eq.f32.partialorder %v265_v16, 8.507059e+37 }
  0xa0   : > { %v389_v11 = vpop.eup %388 }
  0xa1   : > { %v257_v12 = vmul.f32 %v389_v11, %v255_v10  ;;  %vm262_vm1 = vweird.f32 %v389_v11  ;;  %v391_v23 = vpop.eup %390 }
  0xa2   : > { %vm263_vm3 = vmor %vm261_vm2, %vm262_vm1 }
  0xa3   : > { %v258_v13 = vsub.f32 1.0, %v257_v12 }
  0xa5   : > { %v259_v15 = vmul.f32 %v389_v11, %v258_v13 }
  0xa7   : > { %v260_v17 = vadd.f32 %v389_v11, %v259_v15 }
  0xa9   : > { %v264_v19 = vsel %vm263_vm3, %v389_v11, %v260_v17 }
  0xaa   : > { %v269_v20 = vsel %vm266_vm4, %v268_v18, %v264_v19 }
  0xab   : > { %272 = vrot.lane.b32.xlu0 %v269_v20, %s400_s9 }
 0x11d   : > { %v273_v24 = vpop.permute.xlu0 %272 }
 0x11e   : > { %v275_v25 = vmul.f32 %v391_v23, %v273_v24 }
 0x120   : > { %372 = vmatmul.msk.f32.vlgmr.msra.gmra.mxu1 %vm284_vm5, %v275_v25 }
 0x19d   : > { %v305_v27 = vpop.f32.mrf.mxu1 }
 0x19e   : > { %v306_v28 = vadd.f32 %v385_v26, %v305_v27 }
 0x1a0   : > { %309 = vst.msk [vmem:[%s219_s20] sm:$0xff] %vm308_vm6, %v306_v28 }
 0x1a1 PF: > { %s15_s18 = sadd.s32 1, %s398_s18  }
 0x1a2   : > { %p12_p4 = scmp.ge.s32.totalorder %s15_s18, 4  }
 0x1a4   :  { %14 = sbr.rel (!%p12_p4) target bundleno = 1 (0x1), region = 70 }

</bundles_post_ra>
